<compile_context>
chip_gen: v7x
topology: tpu7x:2x2x1
jax: 0.10.0
libtpu: 0.0.40
codegen_flags: <defaults>
</compile_context>

<pallas_src>
import jax
import jax.numpy as jnp
from jax.experimental import pallas as pl
from jax.experimental.pallas import tpu as pltpu


def _round_up(x: int, m: int) -> int:
    return ((x + m - 1) // m) * m


def _cdiv(a: int, b: int) -> int:
    return -(-a // b)


def _mlp_kernel(x_ref, w1_ref, b12_ref, w2_ref, wh_ref, bh_ref, out_ref):
    # 3 bf16 MXU matmuls (layer1, layer2, fused pi+vf head), f32 accumulation,
    # bias/ReLU in f32 on the VPU, single lane-dense output store.
    x = x_ref[...].astype(jnp.bfloat16)
    b12 = b12_ref[...]                                   # f32 [2, Hp]: row0=b1, row1=b2
    h1 = jnp.dot(x, w1_ref[...], preferred_element_type=jnp.float32) + b12[0:1, :]
    h1 = jnp.maximum(h1, 0.0).astype(jnp.bfloat16)
    h2 = jnp.dot(h1, w2_ref[...], preferred_element_type=jnp.float32) + b12[1:2, :]
    h2 = jnp.maximum(h2, 0.0).astype(jnp.bfloat16)
    out_ref[...] = (jnp.dot(h2, wh_ref[...], preferred_element_type=jnp.float32)
                    + bh_ref[...]).astype(out_ref.dtype)


def _choose_batch_tile(B: int, tile_b: int):
    """Pick (TB, Bp): TB multiple of 16 (bf16 sublane packing), >=2 tiles for large
    batches (v7x megacore), and < 16 padded rows per tile (no near-2x pad waste)."""
    MIN_TB = 16
    cap = max(MIN_TB, _round_up(tile_b, MIN_TB))
    if B <= cap:
        n_tiles = 2 if B >= 512 else 1   # split big single-tile batches across 2 TCs
    else:
        n_tiles = _cdiv(B, cap)
    TB = _round_up(max(MIN_TB, _cdiv(B, n_tiles)), MIN_TB)
    Bp = _round_up(B, TB)
    return TB, Bp


def custom_network_forward_slab(features, params, *, tile_b: int = 1024):
    """features: [B, F] float32.  Returns the fused head slab [B, d_pi + d_vf] f32."""
    B, F = features.shape
    d_head = int(params["d_pi"]) + int(params["d_vf"])
    w1 = params["w1"]                     # [F, Hp]   bf16
    w2 = params["w2"]                     # [Hp, Hp]  bf16
    wh = params["wh"]                     # [Hp, Hpad] bf16, Hpad % 128 == 0
    b12 = params["b12"]                   # [2, Hp]   f32
    bh = params["bh"]                     # [1, Hpad] f32
    Hp, Hpad = wh.shape

    TB, Bp = _choose_batch_tile(B, tile_b)
    x = features if Bp == B else jnp.pad(features, ((0, Bp - B), (0, 0)))

    param_bytes = sum(int(p.size) * p.dtype.itemsize for p in (w1, w2, wh, b12, bh))
    cost = pl.CostEstimate(
        flops=2 * Bp * (F * Hp + Hp * Hp + Hp * Hpad),
        transcendentals=0,
        bytes_accessed=int(x.size) * 4 + Bp * Hpad * 4 + param_bytes,
    )

    out = pl.pallas_call(
        _mlp_kernel,
        out_shape=jax.ShapeDtypeStruct((Bp, Hpad), jnp.float32),
        grid_spec=pltpu.PrefetchScalarGridSpec(
            num_scalar_prefetch=0,
            grid=(Bp // TB,),
            in_specs=[
                # Activations: tiled along batch.
                pl.BlockSpec((TB, F), lambda i: (i, 0)),
                # Parameters: constant index_map -> resident in VMEM across tiles.
                pl.BlockSpec(w1.shape, lambda i: (0, 0)),
                pl.BlockSpec(b12.shape, lambda i: (0, 0)),
                pl.BlockSpec(w2.shape, lambda i: (0, 0)),
                pl.BlockSpec(wh.shape, lambda i: (0, 0)),
                pl.BlockSpec(bh.shape, lambda i: (0, 0)),
            ],
            out_specs=pl.BlockSpec((TB, Hpad), lambda i: (i, 0)),
        ),
        compiler_params=pltpu.CompilerParams(
            dimension_semantics=("parallel",),
        ),
        cost_estimate=cost,
    )(x, w1, b12, w2, wh, bh)

    # Single slab slice; consumers split pi/vf without another HBM round-trip.
    return out[:B, :d_head]


def custom_network_forward(features, params, *, tile_b: int = 1024):
    """Returns (pi_latent [B, d_pi], vf_latent [B, d_vf]) as float32."""
    slab = custom_network_forward_slab(features, params, tile_b=tile_b)
    d_pi = int(params["d_pi"])
    return slab[:, :d_pi], slab[:, d_pi:]


def init_params(key, feature_dim, last_layer_dim_pi, last_layer_dim_vf, hidden=192):
    """Deterministic synthetic init (PyTorch-Linear-like uniform fan-in scaling).

    Weights stored transposed [in, out], zero-padded and packed for the kernel:
      Hp  = round_up(hidden, 128) = 256 for hidden=192 (lane-dense activations)
      w1  = [F, Hp]      bf16 (cols >= hidden are zero)
      w2  = [Hp, Hp]     bf16 (rows/cols >= hidden are zero)
      b12 = [2, Hp]      f32  (b1 stacked on b2, zero-padded)
      wh  = [Hp, Hpad]   bf16 (wp | wv, rows >= hidden zero, cols padded to 128)
      bh  = [1, Hpad]    f32  (bp | bv, zero-padded)
    Zero padding is exact through bias-add(0) + ReLU, so results match the
    unpadded network (up to bf16 matmul rounding).
    """
    def linear(k, fan_in, fan_out):
        kw, kb = jax.random.split(k)
        bound = 1.0 / jnp.sqrt(fan_in)
        w = jax.random.uniform(kw, (fan_in, fan_out), jnp.float32, -bound, bound)
        b = jax.random.uniform(kb, (1, fan_out), jnp.float32, -bound, bound)
        return w, b

    k1, k2, k3, k4 = jax.random.split(key, 4)
    w1, b1 = linear(k1, feature_dim, hidden)
    w2, b2 = linear(k2, hidden, hidden)
    wp, bp = linear(k3, hidden, last_layer_dim_pi)
    wv, bv = linear(k4, hidden, last_layer_dim_vf)

    Hp = _round_up(hidden, 128)
    ph = Hp - hidden
    d_head = last_layer_dim_pi + last_layer_dim_vf
    Hpad = _round_up(d_head, 128)

    w1 = jnp.pad(w1, ((0, 0), (0, ph)))
    b1 = jnp.pad(b1, ((0, 0), (0, ph)))
    w2 = jnp.pad(w2, ((0, ph), (0, ph)))
    b2 = jnp.pad(b2, ((0, 0), (0, ph)))
    wh = jnp.concatenate([wp, wv], axis=1)
    bh = jnp.concatenate([bp, bv], axis=1)
    wh = jnp.pad(wh, ((0, ph), (0, Hpad - d_head)))
    bh = jnp.pad(bh, ((0, 0), (0, Hpad - d_head)))
    b12 = jnp.concatenate([b1, b2], axis=0)

    return dict(
        w1=w1.astype(jnp.bfloat16),
        w2=w2.astype(jnp.bfloat16),
        wh=wh.astype(jnp.bfloat16),
        b12=b12,                      # f32
        bh=bh,                        # f32
        d_pi=last_layer_dim_pi,
        d_vf=last_layer_dim_vf,
    )


def _reference_forward(features, p):
    # Pure-JAX reference with the same bf16-operand / f32-accumulate numerics.
    d_pi, d_vf = int(p["d_pi"]), int(p["d_vf"])
    x = features.astype(jnp.bfloat16)
    h1 = jnp.maximum(jnp.dot(x, p["w1"], preferred_element_type=jnp.float32)
                     + p["b12"][0:1, :], 0.0)
    h2 = jnp.maximum(jnp.dot(h1.astype(jnp.bfloat16), p["w2"],
                             preferred_element_type=jnp.float32)
                     + p["b12"][1:2, :], 0.0)
    head = (jnp.dot(h2.astype(jnp.bfloat16), p["wh"],
                    preferred_element_type=jnp.float32) + p["bh"])
    return head[:, :d_pi], head[:, d_pi:d_pi + d_vf]


if __name__ == "__main__":
    key = jax.random.PRNGKey(0)
    k_feat, k_param = jax.random.split(key)

    batch = 8
    feature_dim = 32
    last_layer_dim_pi = 16
    last_layer_dim_vf = 16

    features = jax.random.normal(k_feat, (batch, feature_dim), jnp.float32)
    params = init_params(k_param, feature_dim, last_layer_dim_pi, last_layer_dim_vf)

    pi_latent, vf_latent = custom_network_forward(features, params)
    jax.block_until_ready((pi_latent, vf_latent))

    # Sanity check against pure-JAX reference (bf16 matmuls -> loosened tolerance).
    pi_ref, vf_ref = _reference_forward(features, params)
    assert pi_latent.shape == (batch, last_layer_dim_pi)
    assert vf_latent.shape == (batch, last_layer_dim_vf)
    assert pi_latent.dtype == jnp.float32 and vf_latent.dtype == jnp.float32
    assert jnp.allclose(pi_latent, pi_ref, atol=1e-2, rtol=1e-2)
    assert jnp.allclose(vf_latent, vf_ref, atol=1e-2, rtol=1e-2)

    print("KERNEL_OK")
</pallas_src>

<mosaic_0001>
module attributes {stable_mosaic.version = 11 : i64} {
  func.func @_mlp_kernel(%arg0: i32, %arg1: memref<16x32xf32, #tpu.memory_space<vmem>>, %arg2: memref<32x256xbf16, #tpu.memory_space<vmem>>, %arg3: memref<2x256xf32, #tpu.memory_space<vmem>>, %arg4: memref<256x256xbf16, #tpu.memory_space<vmem>>, %arg5: memref<256x128xbf16, #tpu.memory_space<vmem>>, %arg6: memref<1x128xf32, #tpu.memory_space<vmem>>, %arg7: memref<16x128xf32, #tpu.memory_space<vmem>>) attributes {dimension_semantics = [#tpu.dimension_semantics<parallel>], iteration_bounds = array<i64: 1>, scalar_prefetch = 0 : i64, scratch_operands = 0 : i64, tpu.core_type = #tpu.core_type<tc>, window_params = [{transform_indices = @transform_0, window_bounds = array<i64: 16, 32>}, {pipeline_mode = #tpu.pipeline_mode<synchronous>, transform_indices = @transform_1, window_bounds = array<i64: 32, 256>}, {pipeline_mode = #tpu.pipeline_mode<synchronous>, transform_indices = @transform_2, window_bounds = array<i64: 2, 256>}, {pipeline_mode = #tpu.pipeline_mode<synchronous>, transform_indices = @transform_3, window_bounds = array<i64: 256, 256>}, {pipeline_mode = #tpu.pipeline_mode<synchronous>, transform_indices = @transform_4, window_bounds = array<i64: 256, 128>}, {pipeline_mode = #tpu.pipeline_mode<synchronous>, transform_indices = @transform_5, window_bounds = array<i64: 1, 128>}, {transform_indices = @transform_6, window_bounds = array<i64: 16, 128>}]} {
    %c0 = arith.constant 0 : index
    %c0_0 = arith.constant 0 : index
    %0 = vector.load %arg1[%c0, %c0_0] : memref<16x32xf32, #tpu.memory_space<vmem>>, vector<16x32xf32>
    %1 = arith.truncf %0 : vector<16x32xf32> to vector<16x32xbf16>
    %c0_1 = arith.constant 0 : index
    %c0_2 = arith.constant 0 : index
    %2 = vector.load %arg3[%c0_1, %c0_2] : memref<2x256xf32, #tpu.memory_space<vmem>>, vector<2x256xf32>
    %c0_3 = arith.constant 0 : index
    %c0_4 = arith.constant 0 : index
    %3 = vector.load %arg2[%c0_3, %c0_4] : memref<32x256xbf16, #tpu.memory_space<vmem>>, vector<32x256xbf16>
    %cst = arith.constant dense<0.000000e+00> : vector<16x256xf32>
    %4 = tpu.matmul %1, %3, %cst {dimension_numbers = #tpu.dot_dimension_numbers<[1], [0], [0], [1], [0, 0, 1, 1], [], []>} : vector<16x32xbf16>, vector<32x256xbf16>, vector<16x256xf32> -> vector<16x256xf32>
    %5 = vector.extract_strided_slice %2 {offsets = [0, 0], sizes = [1, 256], strides = [1, 1]} : vector<2x256xf32> to vector<1x256xf32>
    %6 = vector.broadcast %5 : vector<1x256xf32> to vector<16x256xf32>
    %7 = arith.addf %4, %6 : vector<16x256xf32>
    %cst_5 = arith.constant 0.000000e+00 : f32
    %8 = vector.broadcast %cst_5 : f32 to vector<16x256xf32>
    %9 = arith.maximumf %7, %8 : vector<16x256xf32>
    %10 = arith.truncf %9 : vector<16x256xf32> to vector<16x256xbf16>
    %c0_6 = arith.constant 0 : index
    %c0_7 = arith.constant 0 : index
    %11 = vector.load %arg4[%c0_6, %c0_7] : memref<256x256xbf16, #tpu.memory_space<vmem>>, vector<256x256xbf16>
    %cst_8 = arith.constant dense<0.000000e+00> : vector<16x256xf32>
    %12 = tpu.matmul %10, %11, %cst_8 {dimension_numbers = #tpu.dot_dimension_numbers<[1], [0], [0], [1], [0, 0, 1, 1], [], []>} : vector<16x256xbf16>, vector<256x256xbf16>, vector<16x256xf32> -> vector<16x256xf32>
    %13 = vector.extract_strided_slice %2 {offsets = [1, 0], sizes = [1, 256], strides = [1, 1]} : vector<2x256xf32> to vector<1x256xf32>
    %14 = vector.broadcast %13 : vector<1x256xf32> to vector<16x256xf32>
    %15 = arith.addf %12, %14 : vector<16x256xf32>
    %cst_9 = arith.constant 0.000000e+00 : f32
    %16 = vector.broadcast %cst_9 : f32 to vector<16x256xf32>
    %17 = arith.maximumf %15, %16 : vector<16x256xf32>
    %18 = arith.truncf %17 : vector<16x256xf32> to vector<16x256xbf16>
    %c0_10 = arith.constant 0 : index
    %c0_11 = arith.constant 0 : index
    %19 = vector.load %arg5[%c0_10, %c0_11] : memref<256x128xbf16, #tpu.memory_space<vmem>>, vector<256x128xbf16>
    %cst_12 = arith.constant dense<0.000000e+00> : vector<16x128xf32>
    %20 = tpu.matmul %18, %19, %cst_12 {dimension_numbers = #tpu.dot_dimension_numbers<[1], [0], [0], [1], [0, 0, 1, 1], [], []>} : vector<16x256xbf16>, vector<256x128xbf16>, vector<16x128xf32> -> vector<16x128xf32>
    %c0_13 = arith.constant 0 : index
    %c0_14 = arith.constant 0 : index
    %21 = vector.load %arg6[%c0_13, %c0_14] : memref<1x128xf32, #tpu.memory_space<vmem>>, vector<1x128xf32>
    %22 = vector.broadcast %21 : vector<1x128xf32> to vector<16x128xf32>
    %23 = arith.addf %20, %22 : vector<16x128xf32>
    %c0_15 = arith.constant 0 : index
    %c0_16 = arith.constant 0 : index
    %24 = vector.load %arg7[%c0_15, %c0_16] : memref<16x128xf32, #tpu.memory_space<vmem>>, vector<16x128xf32>
    tpu.vector_store %arg7[%c0_15, %c0_16], %23 {strides = array<i32>} : memref<16x128xf32, #tpu.memory_space<vmem>>, vector<16x128xf32>,
    return
  }
  func.func @transform_0(%arg0: i32) -> (i32, i32) {
    %c0_i32 = arith.constant 0 : i32
    %c0_i32_0 = arith.constant 0 : i32
    return %arg0, %c0_i32 : i32, i32
  }
  func.func @transform_1(%arg0: i32) -> (i32, i32) {
    %c0_i32 = arith.constant 0 : i32
    %c0_i32_0 = arith.constant 0 : i32
    %c0_i32_1 = arith.constant 0 : i32
    return %c0_i32, %c0_i32_0 : i32, i32
  }
  func.func @transform_2(%arg0: i32) -> (i32, i32) {
    %c0_i32 = arith.constant 0 : i32
    %c0_i32_0 = arith.constant 0 : i32
    %c0_i32_1 = arith.constant 0 : i32
    return %c0_i32, %c0_i32_0 : i32, i32
  }
  func.func @transform_3(%arg0: i32) -> (i32, i32) {
    %c0_i32 = arith.constant 0 : i32
    %c0_i32_0 = arith.constant 0 : i32
    %c0_i32_1 = arith.constant 0 : i32
    return %c0_i32, %c0_i32_0 : i32, i32
  }
  func.func @transform_4(%arg0: i32) -> (i32, i32) {
    %c0_i32 = arith.constant 0 : i32
    %c0_i32_0 = arith.constant 0 : i32
    %c0_i32_1 = arith.constant 0 : i32
    return %c0_i32, %c0_i32_0 : i32, i32
  }
  func.func @transform_5(%arg0: i32) -> (i32, i32) {
    %c0_i32 = arith.constant 0 : i32
    %c0_i32_0 = arith.constant 0 : i32
    %c0_i32_1 = arith.constant 0 : i32
    return %c0_i32, %c0_i32_0 : i32, i32
  }
  func.func @transform_6(%arg0: i32) -> (i32, i32) {
    %c0_i32 = arith.constant 0 : i32
    %c0_i32_0 = arith.constant 0 : i32
    return %arg0, %c0_i32 : i32, i32
  }
}

</mosaic_0001>

<bundles_post_ra>
// kernel: tpu_custom_call.1
= control target key start
LH: loop header
LB: loop body
LE: loop exit
PB: predicated region body
PF: predicated region fallthrough
CT: control target
= control target key end

     0   :  { %11 = vsyncpa [#allocation3], 0  ;;  %s1047_s0 = inlined_call_operand.hbm [shape: f32[16,32], index: 0, kind: input, shape index: {}]   ;;  %s1048_s1 = inlined_call_operand.hbm [shape: bf16[32,256], index: 1, kind: input, shape index: {}]   ;;  %s1049_s2 = inlined_call_operand.vmem [shape: f32[2,256], index: 2, kind: input, shape index: {}]   ;;  %s1050_s3 = inlined_call_operand.hbm [shape: bf16[256,256], index: 3, kind: input, shape index: {}]   ;;  %s1051_s4 = inlined_call_operand.hbm [shape: bf16[256,128], index: 4, kind: input, shape index: {}]   ;;  %s1052_s5 = inlined_call_operand.vmem [shape: f32[1,128], index: 5, kind: input, shape index: {}]   ;;  %s1053_s6 = inlined_call_operand.hbm [shape: f32[16,128], index: 6, kind: output, shape index: {}]  }
   0x1   :  { %12 = vsyncpa [#allocation6], 0 }
   0x2   :  { %13 = vsyncpa [#allocation9], 0 }
   0x3   :  { %14 = vsyncpa [#allocation4], 0  ;;  %s910_s21 = smov [#allocation5]   ;;  %s911_s23 = smov [#allocation2]  }
   0x4   :  { %s32_s22 = sshll.u32 %s910_s21, 4  ;;  %s20_s24 = sshll.u32 %s911_s23, 4  ;;  %s33_s22 = int_to_ptr.vmem [resolvable:$true] %s32_s22  ;;  %s955_s24 = int_to_ptr.vmem [resolvable:$true] %s20_s24 }
   0x5   :  { %s792_s27 = scalar_lea.hbm %s1048_s1, 512 }
   0x6   :  { %p793_p0 = scmp.ne.s32.totalorder %s1048_s1, %s792_s27  ;;  %p796_p1 = scmp.lt.u32.totalorder %s792_s27, %s1048_s1 }
   0x8   :  { %p798_p2 = pnand %p796_p1, %p793_p0 }
   0xa   :  { %801 = shalt.err (!%p798_p2)
}
   0xb   :  { %s802_s8 = scalar_lea.vmem %s33_s22, 512  ;;  %p807_p4 = scmp.lt.s32.totalorder %s33_s22, %s33_s22 }
   0xc   :  { %p803_p3 = scmp.ne.s32.totalorder %s33_s22, %s802_s8  ;;  %p808_p5 = scmp.lt.s32.totalorder %s802_s8, %s802_s8 }
   0xe   :  { %p809_p6 = por %p808_p5, %p807_p4 }
  0x10   :  { %p810_p7 = pnand %p809_p6, %p803_p3 }
  0x12   :  { %813 = shalt.err (!%p810_p7)
}
  0x13   :  { %s912_s9 = smov 128   ;;  %s913_s10 = smov 8  }
  0x14   :  { %38 = dma.hbm_to_vmem [thread:$0]  %s1048_s1, 512, %s33_s22, [#allocation6], %s912_s9, %s912_s9, %s913_s10  }
  0x15   :  { %s814_s15 = scalar_lea.hbm %s1047_s0, 256 }
  0x16   :  { %p815_p8 = scmp.ne.s32.totalorder %s1047_s0, %s814_s15  ;;  %p818_p9 = scmp.lt.u32.totalorder %s814_s15, %s1047_s0 }
  0x18   :  { %p820_p10 = pnand %p818_p9, %p815_p8 }
  0x1a   :  { %823 = shalt.err (!%p820_p10)
}
  0x1b   :  { %s824_s20 = scalar_lea.vmem %s955_s24, 256  ;;  %p829_p12 = scmp.lt.s32.totalorder %s955_s24, %s955_s24 }
  0x1c   :  { %p825_p11 = scmp.ne.s32.totalorder %s955_s24, %s824_s20  ;;  %p830_p13 = scmp.lt.s32.totalorder %s824_s20, %s824_s20 }
  0x1e   :  { %p831_p0 = por %p830_p13, %p829_p12 }
  0x20   :  { %p832_p1 = pnand %p831_p0, %p825_p11 }
  0x22   :  { %835 = shalt.err (!%p832_p1)
}
  0x23   :  { %26 = dma.hbm_to_vmem [thread:$0]  %s1047_s0, 256, %s955_s24, [#allocation3], %s912_s9, %s912_s9, %s913_s10  }
  0x24   :  { %s914_s22 = smov [#allocation7]   ;;  %s915_s25 = smov [#allocation8]  }
  0x25   :  { %s46_s23 = sshll.u32 %s914_s22, 4  ;;  %s58_s26 = sshll.u32 %s915_s25, 4  ;;  %s47_s23 = int_to_ptr.vmem [resolvable:$true] %s46_s23  ;;  %s992_s26 = int_to_ptr.vmem [resolvable:$true] %s58_s26 }
  0x26   :  { %s836_s29 = scalar_lea.hbm %s1050_s3, 4096 }
  0x27   :  { %p837_p2 = scmp.ne.s32.totalorder %s1050_s3, %s836_s29  ;;  %p840_p3 = scmp.lt.u32.totalorder %s836_s29, %s1050_s3 }
  0x29   :  { %p842_p4 = pnand %p840_p3, %p837_p2 }
  0x2b   :  { %845 = shalt.err (!%p842_p4)
}
  0x2c   :  { %s846_s0 = scalar_lea.vmem %s47_s23, 4096  ;;  %p851_p6 = scmp.lt.s32.totalorder %s47_s23, %s47_s23 }
  0x2d   :  { %p847_p5 = scmp.ne.s32.totalorder %s47_s23, %s846_s0  ;;  %p852_p7 = scmp.lt.s32.totalorder %s846_s0, %s846_s0 }
  0x2f   :  { %p853_p8 = por %p852_p7, %p851_p6 }
  0x31   :  { %p854_p9 = pnand %p853_p8, %p847_p5 }
  0x33   :  { %857 = shalt.err (!%p854_p9)
}
  0x34   :  { %52 = dma.hbm_to_vmem [thread:$0]  %s1050_s3, 4096, %s47_s23, [#allocation6], %s912_s9, %s912_s9, %s913_s10  }
  0x35   :  { %s858_s15 = scalar_lea.hbm %s1051_s4, 2048 }
  0x36   :  { %p859_p10 = scmp.ne.s32.totalorder %s1051_s4, %s858_s15  ;;  %p862_p11 = scmp.lt.u32.totalorder %s858_s15, %s1051_s4 }
  0x38   :  { %p864_p12 = pnand %p862_p11, %p859_p10 }
  0x3a   :  { %867 = shalt.err (!%p864_p12)
}
  0x3b   :  { %s868_s20 = scalar_lea.vmem %s992_s26, 2048  ;;  %p873_p0 = scmp.lt.s32.totalorder %s992_s26, %s992_s26 }
  0x3c   :  { %p869_p13 = scmp.ne.s32.totalorder %s992_s26, %s868_s20  ;;  %p874_p1 = scmp.lt.s32.totalorder %s868_s20, %s868_s20 }
  0x3e   :  { %p875_p2 = por %p874_p1, %p873_p0 }
  0x40   :  { %p876_p3 = pnand %p875_p2, %p869_p13 }
  0x42   :  { %879 = shalt.err (!%p876_p3)
}
  0x43   :  { %s916_s3 = smov 64   ;;  %s917_s1 = smov 4  }
  0x44   :  { %64 = dma.hbm_to_vmem [thread:$0]  %s1051_s4, 2048, %s992_s26, [#allocation9], %s916_s3, %s916_s3, %s917_s1  }
  0x45   :  { %902 = dma.done.wait [#allocation3], 256  }
  0x46   :  { %903 = vsyncadd [#allocation3], 4294967040 }
  0x47   :  { %904 = dma.done.wait [#allocation6], 4608  }
  0x48   :  { %905 = vsyncadd [#allocation6], 4294962688 }
  0x49   :  { %906 = dma.done.wait [#allocation9], 2048  }
  0x4a   :  { %907 = vsyncadd [#allocation9], 4294965248  ;;  %v918_v0 = vmov 0   ;;  %v722_v1 = vld [vmem:[#allocation5 + $0x4] ss:$8 sps:$4 sm:$0xff]   ;;  %v80_v5 = vld [vmem:[#allocation2] sm:$0xff]  ;;  %v89_v51 = vlaneseq }
  0x4b   :  { %163 = vmatprep.mubr.bf16.mxu0 %v918_v0  ;;  %v724_v2 = vld [vmem:[#allocation5] ss:$8 sps:$4 sm:$0xff]   ;;  %131 = vmatprep.subr.bf16.mxu0 %v722_v1  ;;  %v725_v3 = vld [vmem:[#allocation5 + $0x14] ss:$8 sps:$4 sm:$0xff]   ;;  %v727_v4 = vld [vmem:[#allocation5 + $0x10] ss:$8 sps:$4 sm:$0xff]  }
  0x4c   :  { %132 = vmatpush1.bf16.msra.mxu0 %v724_v2  ;;  %v81_v6 = vld [vmem:[#allocation2 + $0x8] sm:$0xff]  ;;  %v728_v7 = vld [vmem:[#allocation7 + $0x4] ss:$8 sps:$4 sm:$0xff]   ;;  %v730_v8 = vld [vmem:[#allocation7] ss:$8 sps:$4 sm:$0xff]   ;;  %vm127_vm0 = vcmask 261120  }
  0x4d   :  { %133 = vmatprep.subr.bf16.mxu0 %v725_v3  ;;  %v731_v9 = vld [vmem:[#allocation7 + $0x14] ss:$8 sps:$4 sm:$0xff]   ;;  %v82_v10 = vpack.c.bf16 %v81_v6, %v80_v5  ;;  %390 = vmatprep.subr.bf16.mxu1 %v728_v7  ;;  %v733_v11 = vld [vmem:[#allocation7 + $0x10] ss:$8 sps:$4 sm:$0xff]   ;;  %v734_v12 = vld [vmem:[#allocation7 + $0x24] ss:$8 sps:$4 sm:$0xff]  }
  0x4e   :  { %391 = vmatpush1.bf16.msra.mxu1 %v730_v8  ;;  %v736_v13 = vld [vmem:[#allocation7 + $0x20] ss:$8 sps:$4 sm:$0xff]   ;;  %v737_v14 = vld [vmem:[#allocation7 + $0x34] ss:$8 sps:$4 sm:$0xff]   ;;  %v739_v15 = vld [vmem:[#allocation7 + $0x30] ss:$8 sps:$4 sm:$0xff]  }
  0x4f   :  { %392 = vmatprep.subr.bf16.mxu1 %v731_v9  ;;  %v740_v16 = vld [vmem:[#allocation7 + $0x44] ss:$8 sps:$4 sm:$0xff]   ;;  %v742_v17 = vld [vmem:[#allocation7 + $0x40] ss:$8 sps:$4 sm:$0xff]   ;;  %v743_v18 = vld [vmem:[#allocation7 + $0x54] ss:$8 sps:$4 sm:$0xff]  }
  0x50   :  { %134 = vmatpush1.bf16.msra.mxu0 %v727_v4  ;;  %v745_v19 = vld [vmem:[#allocation7 + $0x50] ss:$8 sps:$4 sm:$0xff]   ;;  %v746_v20 = vld [vmem:[#allocation7 + $0x64] ss:$8 sps:$4 sm:$0xff]   ;;  %v748_v21 = vld [vmem:[#allocation7 + $0x60] ss:$8 sps:$4 sm:$0xff]  }
  0x51   :  { %v749_v22 = vld [vmem:[#allocation7 + $0x74] ss:$8 sps:$4 sm:$0xff]   ;;  %v751_v23 = vld [vmem:[#allocation7 + $0x70] ss:$8 sps:$4 sm:$0xff]   ;;  %v752_v24 = vld [vmem:[#allocation7 + $0x84] ss:$8 sps:$4 sm:$0xff]  }
  0x52   :  { %393 = vmatpush1.bf16.msra.mxu1 %v733_v11  ;;  %v754_v25 = vld [vmem:[#allocation7 + $0x80] ss:$8 sps:$4 sm:$0xff]   ;;  %v755_v26 = vld [vmem:[#allocation7 + $0x94] ss:$8 sps:$4 sm:$0xff]   ;;  %v757_v27 = vld [vmem:[#allocation7 + $0x90] ss:$8 sps:$4 sm:$0xff]  }
  0x53   :  { %640 = vmatmul.mubr.msk.bf16.vlgmr.msra.gmra.mrb[0].mxu0 %vm127_vm0, %v82_v10  ;;  %394 = vmatprep.subr.bf16.mxu1 %v734_v12  ;;  %v758_v28 = vld [vmem:[#allocation7 + $0xa4] ss:$8 sps:$4 sm:$0xff]   ;;  %v760_v29 = vld [vmem:[#allocation7 + $0xa0] ss:$8 sps:$4 sm:$0xff]   ;;  %v761_v30 = vld [vmem:[#allocation7 + $0xb4] ss:$8 sps:$4 sm:$0xff]  }
  0x54   :  { %v763_v31 = vld [vmem:[#allocation7 + $0xb0] ss:$8 sps:$4 sm:$0xff]   ;;  %v764_v32 = vld [vmem:[#allocation7 + $0xc4] ss:$8 sps:$4 sm:$0xff]   ;;  %v766_v33 = vld [vmem:[#allocation7 + $0xc0] ss:$8 sps:$4 sm:$0xff]  }
  0x55   :  { %v767_v34 = vld [vmem:[#allocation7 + $0xd4] ss:$8 sps:$4 sm:$0xff]   ;;  %v769_v35 = vld [vmem:[#allocation7 + $0xd0] ss:$8 sps:$4 sm:$0xff]   ;;  %v770_v36 = vld [vmem:[#allocation7 + $0xe4] ss:$8 sps:$4 sm:$0xff]  }
  0x56   :  { %395 = vmatpush1.bf16.msra.mxu1 %v736_v13  ;;  %v772_v37 = vld [vmem:[#allocation7 + $0xe0] ss:$8 sps:$4 sm:$0xff]   ;;  %v773_v38 = vld [vmem:[#allocation7 + $0xf4] ss:$8 sps:$4 sm:$0xff]   ;;  %v775_v39 = vld [vmem:[#allocation7 + $0xf0] ss:$8 sps:$4 sm:$0xff]  }
  0x57   :  { %396 = vmatprep.subr.bf16.mxu1 %v737_v14  ;;  %v776_v40 = vld [vmem:[#allocation8 + $0x40] sm:$0xff]   ;;  %v778_v42 = vld [vmem:[#allocation8 + $0x48] sm:$0xff]   ;;  %v780_v44 = vld [vmem:[#allocation8 + $0x50] sm:$0xff]   ;;  %v90_v52 = vshrl.u32 %v89_v51, 7  ;;  %s919_s26 = smov [#allocation10]  }
  0x58   :  { %v777_v41 = vld [vmem:[#allocation8] sm:$0xff]   ;;  %690 = vmatprep.subr.bf16.mxu0 %v776_v40  ;;  %v779_v43 = vld [vmem:[#allocation8 + $0x8] sm:$0xff]   ;;  %v781_v45 = vld [vmem:[#allocation8 + $0x10] sm:$0xff]   ;;  %s622_s27 = sshll.u32 %s919_s26, 4  ;;  %s623_s27 = int_to_ptr.vmem [resolvable:$true] %s622_s27 }
  0x59   :  { %691 = vmatpush3.bf16.msra.mxu0 %v777_v41  ;;  %v782_v46 = vld [vmem:[#allocation8 + $0x58] sm:$0xff]   ;;  %v784_v48 = vld [vmem:[#allocation8 + $0x60] sm:$0xff]   ;;  %v786_v50 = vld [vmem:[#allocation8 + $0x68] sm:$0xff]   ;;  %v91_v53 = vsub.s32 0, %v90_v52  ;;  %v95_v55 = vsub.s32 2, %v90_v52  ;;  %s880_s28 = scalar_lea.vmem %s623_s27, 256  ;;  %p885_p5 = scmp.lt.s32.totalorder %s623_s27, %s623_s27 }
  0x5a   :  { %397 = vmatpush1.bf16.msra.mxu1 %v739_v15  ;;  %692 = vmatprep.subr.bf16.mxu0 %v778_v42  ;;  %v783_v47 = vld [vmem:[#allocation8 + $0x18] sm:$0xff]   ;;  %v785_v49 = vld [vmem:[#allocation8 + $0x20] sm:$0xff]   ;;  %v83_v54 = vld [vmem:[%s1049_s2] sm:$0xf]  ;;  %v214_v15 = vsub.s32 1, %v90_v52  ;;  %p881_p4 = scmp.ne.s32.totalorder %s623_s27, %s880_s28  ;;  %p886_p6 = scmp.lt.s32.totalorder %s880_s28, %s880_s28 }
  0x5b   :  { %398 = vmatprep.subr.bf16.mxu1 %v740_v16  ;;  %v92_v56 = vrot.slane %v83_v54, %v91_v53  ;;  %v96_v57 = vrot.slane %v83_v54, %v95_v55  ;;  %v787_v10 = vld [vmem:[#allocation8 + $0x28] sm:$0xff]   ;;  %v788_v11 = vld [vmem:[#allocation8 + $0x70] sm:$0xff]   ;;  %v790_v13 = vld [vmem:[#allocation8 + $0x78] sm:$0xff]   ;;  %v218_v16 = vsub.s32 3, %v90_v52 }
  0x5c   :  { %v789_v12 = vld [vmem:[#allocation8 + $0x30] sm:$0xff]   ;;  %v791_v14 = vld [vmem:[#allocation8 + $0x38] sm:$0xff]   ;;  %p887_p7 = por %p886_p6, %p885_p5 }
  0x5d   :  { %693 = vmatpush3.bf16.msra.mxu0 %v779_v43  ;;  %v102_v58 = vrot.slane %v92_v56, %v91_v53  ;;  %v106_v59 = vrot.slane %v96_v57, %v91_v53 }
  0x5e   :  { %399 = vmatpush1.bf16.msra.mxu1 %v742_v17  ;;  %694 = vmatprep.subr.bf16.mxu0 %v780_v44  ;;  %v215_v17 = vrot.slane %v83_v54, %v214_v15  ;;  %p888_p8 = pnand %p887_p7, %p881_p4 }
  0x5f   :  { %400 = vmatprep.subr.bf16.mxu1 %v743_v18  ;;  %v219_v18 = vrot.slane %v83_v54, %v218_v16 }
  0x61   :  { %695 = vmatpush3.bf16.msra.mxu0 %v781_v45 }
  0x62   :  { %401 = vmatpush1.bf16.msra.mxu1 %v745_v19  ;;  %696 = vmatprep.subr.bf16.mxu0 %v782_v46  ;;  %v225_v19 = vrot.slane %v215_v17, %v214_v15 }
  0x63   :  { %402 = vmatprep.subr.bf16.mxu1 %v746_v20  ;;  %v229_v20 = vrot.slane %v219_v18, %v214_v15 }
  0x65   :  { %697 = vmatpush3.bf16.msra.mxu0 %v783_v47 }
  0x66   :  { %403 = vmatpush1.bf16.msra.mxu1 %v748_v21  ;;  %698 = vmatprep.subr.bf16.mxu0 %v784_v48 }
  0x67   :  { %404 = vmatprep.subr.bf16.mxu1 %v749_v22 }
  0x69   :  { %699 = vmatpush3.bf16.msra.mxu0 %v785_v49 }
  0x6a   :  { %405 = vmatpush1.bf16.msra.mxu1 %v751_v23  ;;  %700 = vmatprep.subr.bf16.mxu0 %v786_v50 }
  0x6b   :  { %406 = vmatprep.subr.bf16.mxu1 %v752_v24 }
  0x6d   :  { %701 = vmatpush3.bf16.msra.mxu0 %v787_v10 }
  0x6e   :  { %407 = vmatpush1.bf16.msra.mxu1 %v754_v25  ;;  %702 = vmatprep.subr.bf16.mxu0 %v788_v11 }
  0x6f   :  { %408 = vmatprep.subr.bf16.mxu1 %v755_v26 }
  0x71   :  { %703 = vmatpush3.bf16.msra.mxu0 %v789_v12 }
  0x72   :  { %409 = vmatpush1.bf16.msra.mxu1 %v757_v27  ;;  %704 = vmatprep.subr.bf16.mxu0 %v790_v13 }
  0x73   :  { %410 = vmatprep.subr.bf16.mxu1 %v758_v28 }
  0x75   :  { %705 = vmatpush3.bf16.msra.mxu0 %v791_v14 }
  0x76   :  { %411 = vmatpush1.bf16.msra.mxu1 %v760_v29 }
  0x77   :  { %412 = vmatprep.subr.bf16.mxu1 %v761_v30 }
  0x7a   :  { %413 = vmatpush1.bf16.msra.mxu1 %v763_v31 }
  0x7b   :  { %414 = vmatprep.subr.bf16.mxu1 %v764_v32 }
  0x7e   :  { %415 = vmatpush1.bf16.msra.mxu1 %v766_v33 }
  0x7f   :  { %416 = vmatprep.subr.bf16.mxu1 %v767_v34 }
  0x82   :  { %417 = vmatpush1.bf16.msra.mxu1 %v769_v35 }
  0x83   :  { %418 = vmatprep.subr.bf16.mxu1 %v770_v36  ;;  %v673_v36 = vld [vmem:[%s1052_s5] ss:$0 sm:$0xff] }
  0x86   :  { %419 = vmatpush1.bf16.msra.mxu1 %v772_v37 }
  0x87   :  { %420 = vmatprep.subr.bf16.mxu1 %v773_v38 }
  0x8a   :  { %421 = vmatpush1.bf16.msra.mxu1 %v775_v39 }
 0x126   :  { %v165_v60 = vpop.f32.mrb[0].mxu0 }
 0x127   :  { %v166_v61 = vadd.f32 %v165_v60, %v102_v58  ;;  %v167_v62 = vpop.f32.mrb[1].mxu0 }
 0x128   :  { %v168_v63 = vadd.f32 %v167_v62, %v106_v59  ;;  %v169_v0 = vpop.f32.mrb[2].mxu0 }
 0x129   :  { %v170_v1 = vadd.f32 %v169_v0, %v102_v58  ;;  %v171_v2 = vpop.f32.mrb[3].mxu0  ;;  %v174_v4 = vmax.f32 %v166_v61, 0.0 }
 0x12a   :  { %v172_v3 = vadd.f32 %v171_v2, %v106_v59  ;;  %v175_v6 = vmax.f32 %v168_v63, 0.0 }
 0x12b   :  { %v176_v5 = vmax.f32 %v170_v1, 0.0 }
 0x12c   :  { %v177_v7 = vmax.f32 %v172_v3, 0.0 }
 0x12d   :  { %v178_v8 = vpack.c.bf16 %v176_v5, %v174_v4 }
 0x12e   :  { %v179_v9 = vpack.c.bf16 %v177_v7, %v175_v6 }
 0x130   :  { %422 = vmatprep.mubr.bf16.mxu1 %v179_v9 }
 0x131   :  { %423 = vmatmul.mubr.bf16.vlgmr.msra.gmra.mrb[0].mxu1 %v178_v8 }
 0x204   :  { %v424_v21 = vpop.f32.mrb[0].mxu1 }
 0x205   :  { %v425_v22 = vadd.f32 %v424_v21, %v225_v19  ;;  %v426_v23 = vpop.f32.mrb[1].mxu1 }
 0x206   :  { %v427_v24 = vadd.f32 %v426_v23, %v229_v20  ;;  %v428_v25 = vpop.f32.mrb[2].mxu1 }
 0x207   :  { %v429_v26 = vadd.f32 %v428_v25, %v225_v19  ;;  %v430_v27 = vpop.f32.mrb[3].mxu1  ;;  %v433_v29 = vmax.f32 %v425_v22, 0.0 }
 0x208   :  { %v431_v28 = vadd.f32 %v430_v27, %v229_v20  ;;  %v434_v31 = vmax.f32 %v427_v24, 0.0 }
 0x209   :  { %v435_v30 = vmax.f32 %v429_v26, 0.0 }
 0x20a   :  { %v436_v32 = vmax.f32 %v431_v28, 0.0 }
 0x20b   :  { %v437_v33 = vpack.c.bf16 %v435_v30, %v433_v29 }
 0x20c   :  { %v438_v34 = vpack.c.bf16 %v436_v32, %v434_v31 }
 0x20e   :  { %606 = vmatprep.mubr.bf16.mxu0 %v438_v34 }
 0x20f   :  { %607 = vmatmul.mubr.bf16.vlgmr.msra.gmra.mrb[4].mxu0 %v437_v33 }
 0x2e2   :  { %v706_v35 = vpop.f32.mrb[4].mxu0 }
 0x2e3   :  { %v707_v37 = vpop.f32.mrb[5].mxu0 }
 0x2e4   :  { %v708_v38 = vadd.f32 %v707_v37, %v706_v35  ;;  %v709_v39 = vpop.f32.mrb[6].mxu0 }
 0x2e5   :  { %v710_v40 = vpop.f32.mrb[7].mxu0 }
 0x2e6   :  { %v609_v41 = vadd.f32 %v708_v38, %v673_v36  ;;  %v711_v42 = vadd.f32 %v710_v40, %v709_v39 }
 0x2e8   :  { %615 = vst [vmem:[#allocation10] sm:$0xff] %v609_v41  ;;  %v612_v43 = vadd.f32 %v711_v42, %v673_v36 }
 0x2ea   :  { %616 = vst [vmem:[#allocation10 + $0x8] sm:$0xff] %v612_v43 }
 0x2eb   :  { %891 = shalt.err (!%p888_p8)
}
 0x2ec   :  { %s892_s30 = scalar_lea.hbm %s1053_s6, 256 }
 0x2ed   :  { %p893_p9 = scmp.ne.s32.totalorder %s1053_s6, %s892_s30  ;;  %p896_p10 = scmp.lt.u32.totalorder %s892_s30, %s1053_s6 }
 0x2ef   :  { %p898_p11 = pnand %p896_p10, %p893_p9 }
 0x2f1   :  { %901 = shalt.err (!%p898_p11)
}
 0x2f2   :  { %628 = dma.vmem_to_hbm [thread:$0]  %s623_s27, 256, %s1053_s6, [#allocation4], %s912_s9, %s912_s9, %s913_s10  }
 0x2f3   :  { %908 = dma.done.wait [#allocation4], 256  }
 0x2f4   :  { %909 = vsyncadd [#allocation4], 4294967040 }
 0x2f5   :  { %632 = vsyncpa [#allocation3], 1 }
 0x2f6   :  { %633 = vsyncpa [#allocation6], 1 }
 0x2f7   :  { %634 = vsyncpa [#allocation9], 1 }
 0x2f8   :  { %635 = vsyncpa [#allocation4], 1 }

</bundles_post_ra>
